<compile_context>
chip_gen: v6e
topology: v6e:2x2x1
jax: 0.10.0
libtpu: 0.0.40
codegen_flags: <defaults>
</compile_context>

<pallas_src>
import functools

import jax
import jax.numpy as jnp
from jax.experimental import pallas as pl
from jax.experimental.pallas import tpu as pltpu

NEG_INF = -9e15
_MIB = 1 << 20


def _round_up(x, m):
    return ((x + m - 1) // m) * m


def _bf16_softmax_default():
    """bf16 exp only pays off on chips with a bf16 EUP/VPU (v6e, v7x)."""
    try:
        kind = jax.devices()[0].device_kind.lower()
    except Exception:
        return False
    return ("v6" in kind) or ("v7" in kind) or ("trillium" in kind)


def _vmem_limit(nbytes):
    est = int(nbytes * 1.3) + 2 * _MIB
    return int(max(32 * _MIB, min(est, 96 * _MIB)))


# ---------------------------------------------------------------------------
# Kernel 1: fused multi-head projection
#   H   = x @ W_all                       (lane-dense: nheads*nhid columns)
#   f12 = H @ [A1 | A2] (block-diag)  ->  f12[i, h]        = a1_h . H_h[i]
#                                         f12[i, nheads+h] = a2_h . H_h[i]
# ---------------------------------------------------------------------------
def _proj_kernel(x_ref, w_ref, a12_ref, h_ref, f12_ref):
    H = jnp.dot(x_ref[...], w_ref[...], preferred_element_type=jnp.float32)
    Hb = H.astype(jnp.bfloat16)
    h_ref[...] = Hb
    # single fused skinny matmul (A1 and A2 concatenated) — halves LHS pushes
    f12_ref[...] = jnp.dot(Hb, a12_ref[...], preferred_element_type=jnp.float32)


def _project(x_bf, w_bf, a12_bf, tm):
    np_, fin = x_bf.shape
    ftot = w_bf.shape[1]
    ncol = a12_bf.shape[1]                      # 2 * nheads
    vmem = _vmem_limit(2 * tm * fin * 2 + 2 * fin * ftot * 2
                       + 2 * ftot * ncol * 2 + 2 * tm * ftot * 2
                       + 2 * tm * ncol * 4 + 4 * tm * ftot * 4)
    return pl.pallas_call(
        _proj_kernel,
        grid=(np_ // tm,),
        in_specs=[pl.BlockSpec((tm, fin), lambda i: (i, 0)),
                  pl.BlockSpec((fin, ftot), lambda i: (0, 0)),
                  pl.BlockSpec((ftot, ncol), lambda i: (0, 0))],
        out_specs=[pl.BlockSpec((tm, ftot), lambda i: (i, 0)),
                   pl.BlockSpec((tm, ncol), lambda i: (i, 0))],
        out_shape=[jax.ShapeDtypeStruct((np_, ftot), jnp.bfloat16),
                   jax.ShapeDtypeStruct((np_, ncol), jnp.float32)],
        compiler_params=pltpu.CompilerParams(
            dimension_semantics=("parallel",), vmem_limit_bytes=vmem),
    )(x_bf, w_bf, a12_bf)


# ---------------------------------------------------------------------------
# Kernel 2: row-tiled fused multi-head attention + softmax + aggregation
# ---------------------------------------------------------------------------
def _attn_kernel(f1_ref, f2t_ref, bias_ref, aad_ref, w_ref, h_ref, out_ref,
                 *, nheads, fout, alpha, concat, final, bf16_softmax):
    aad = aad_ref[...]          # bf16 (TM, Np); promoted in-op, no f32 copy pass
    bias = bias_ref[...]        # bf16 (TM, Np) additive mask: 0 / -9e15

    for h in range(nheads):                      # static unroll over heads
        w1 = jnp.abs(w_ref[0, h])
        w2 = jnp.abs(w_ref[1, h])
        # |w1| folded into the skinny vectors (LeakyReLU is pos.-homogeneous):
        # O(TM + Np) work instead of a full (TM, Np) multiply per head.
        f1h = f1_ref[:, h:h + 1] * w1            # (TM, 1)
        f2h = f2t_ref[h:h + 1, :] * w1           # (1, Np)
        e = f1h + f2h                            # (TM, Np)
        e = jnp.maximum(e, alpha * e)            # LeakyReLU, valid for 0<alpha<1
        e = e + (w2 * aad + bias)                # masked entries ~ -9e15

        m = jnp.max(e, axis=1, keepdims=True)
        if bf16_softmax:                         # bf16 EUP/VPU path (v6e / v7x)
            p = jnp.exp((e - m).astype(jnp.bfloat16))
            s = jnp.sum(p, axis=1, keepdims=True, dtype=jnp.float32)
        else:                                    # v5e and older: stay in f32
            pf = jnp.exp(e - m)
            s = jnp.sum(pf, axis=1, keepdims=True)
            p = pf.astype(jnp.bfloat16)

        hp = jnp.dot(p, h_ref[:, h * fout:(h + 1) * fout],
                     preferred_element_type=jnp.float32)      # (TM, fout)
        # normalize AFTER the matmul (fout multiplies per row instead of Np)
        hp = hp * pl.reciprocal(s, approx=True)

        if concat or final:      # hidden heads / ADSF tail: ELU
            hp = jnp.where(hp > 0, hp, jnp.exp(jnp.minimum(hp, 0.0)) - 1.0)
        if final:                # ADSF tail: log_softmax(dim=1)
            mm = jnp.max(hp, axis=1, keepdims=True)
            lse = jnp.log(jnp.sum(jnp.exp(hp - mm), axis=1, keepdims=True)) + mm
            hp = hp - lse
        out_ref[:, h * fout:(h + 1) * fout] = hp.astype(out_ref.dtype)


def _attention(f1, f2t, bias_bf, aad_bf, w12, h_bf, tm, *, nheads, fout, alpha,
               concat, final, out_dtype, bf16_softmax):
    np_ = f1.shape[0]
    ftot = nheads * fout
    assert h_bf.shape[1] == ftot
    out_bytes = jnp.dtype(out_dtype).itemsize
    vmem = _vmem_limit(
        2 * tm * nheads * 4            # f1 stripes (double-buffered, f32)
        + 2 * nheads * np_ * 4         # f2^T resident (f32)
        + 2 * 2 * tm * np_ * 2         # bias + adj_ad bf16 stripes, 2 buffers
        + 2 * np_ * ftot * 2           # H resident (bf16)
        + 2 * tm * ftot * out_bytes    # output double-buffer
        + 6 * tm * np_ * 4)            # in-flight f32 temporaries (e, p, ...)
    kernel = functools.partial(_attn_kernel, nheads=nheads, fout=fout,
                               alpha=alpha, concat=concat, final=final,
                               bf16_softmax=bf16_softmax)
    return pl.pallas_call(
        kernel,
        grid=(np_ // tm,),
        in_specs=[pl.BlockSpec((tm, nheads), lambda i: (i, 0)),      # f1 stripe
                  pl.BlockSpec((nheads, np_), lambda i: (0, 0)),     # f2^T resident
                  pl.BlockSpec((tm, np_), lambda i: (i, 0)),         # mask bias stripe
                  pl.BlockSpec((tm, np_), lambda i: (i, 0)),         # adj_ad stripe
                  pl.BlockSpec(memory_space=pltpu.MemorySpace.SMEM), # |w1|/|w2| scalars
                  pl.BlockSpec((np_, ftot), lambda i: (0, 0))],      # H resident (bf16)
        out_specs=pl.BlockSpec((tm, ftot), lambda i: (i, 0)),
        out_shape=jax.ShapeDtypeStruct((np_, ftot), out_dtype),
        compiler_params=pltpu.CompilerParams(
            dimension_semantics=("parallel",), vmem_limit_bytes=vmem),
    )(f1, f2t, bias_bf, aad_bf, w12, h_bf)


# ---------------------------------------------------------------------------
# Host-side plumbing
# ---------------------------------------------------------------------------
def _stack_heads(head_params, nhid):
    """Fuse per-head weights: W -> (Fin, nheads*nhid); [A1|A2] block-diagonal."""
    nheads = len(head_params)
    ftot = nheads * nhid
    W = jnp.concatenate([p["W"] for p in head_params], axis=1)
    A12 = jnp.zeros((ftot, 2 * nheads), jnp.float32)
    for h, p in enumerate(head_params):
        A12 = A12.at[h * nhid:(h + 1) * nhid, h].set(p["a1"][:, 0])
        A12 = A12.at[h * nhid:(h + 1) * nhid, nheads + h].set(p["a2"][0, :])
    w12 = jnp.stack(
        [jnp.concatenate([p["w1"][0] for p in head_params]),
         jnp.concatenate([p["w2"][0] for p in head_params])], axis=0)  # (2, nheads)
    return W, A12, w12


def _run_layer(x_p, W, A12, w12, bias_bf, aad_bf, tm, *, nheads, fout, alpha,
               concat, final, out_dtype, bf16_softmax):
    Hb, f12 = _project(x_p.astype(jnp.bfloat16), W.astype(jnp.bfloat16),
                       A12.astype(jnp.bfloat16), tm)
    f1 = f12[:, :nheads]                          # (Np, nheads)
    f2t = jnp.transpose(f12[:, nheads:])          # (nheads, Np) — tiny, plain XLA
    return _attention(f1, f2t, bias_bf, aad_bf, w12, Hb, tm, nheads=nheads,
                      fout=fout, alpha=alpha, concat=concat, final=final,
                      out_dtype=out_dtype, bf16_softmax=bf16_softmax)


def adsf_forward(x, params, adj, adj_ad, *, alpha, tm=128, bf16_softmax=None):
    if bf16_softmax is None:
        bf16_softmax = _bf16_softmax_default()

    N = x.shape[0]
    nheads = len(params["heads"])
    nhid = params["heads"][0]["W"].shape[1]
    nclass = params["out"]["W"].shape[1]

    tm = min(tm, _round_up(N, 8))
    # give multi-TensorCore chips (v7x) at least 2 row tiles to split across
    if _round_up(N, tm) // tm < 2 and N > 8:
        tm = max(8, _round_up((N + 1) // 2, 8))
    Np = _round_up(N, tm)
    pad = Np - N

    # Additive mask bias (0 where edge, -9e15 elsewhere); bf16 stripes halve DMA.
    bias = jnp.where(adj > 0, 0.0, NEG_INF)
    bias_bf = jnp.pad(bias, ((0, pad), (0, pad)),
                      constant_values=NEG_INF).astype(jnp.bfloat16)
    aad_bf = jnp.pad(adj_ad, ((0, pad), (0, pad))).astype(jnp.bfloat16)
    x_p = jnp.pad(x, ((0, pad), (0, 0)))

    # hidden layer: all heads fused; output emitted directly in bf16
    Wh, A12h, w12h = _stack_heads(params["heads"], nhid)
    h_hidden = _run_layer(x_p, Wh, A12h, w12h, bias_bf, aad_bf, tm,
                          nheads=nheads, fout=nhid, alpha=alpha,
                          concat=True, final=False, out_dtype=jnp.bfloat16,
                          bf16_softmax=bf16_softmax)            # (Np, nheads*nhid)

    # output layer (single head) + fused ELU + log_softmax
    po = params["out"]
    A12o = jnp.concatenate([po["a1"], po["a2"].T], axis=1)      # (nclass, 2)
    w12o = jnp.stack([po["w1"][0], po["w2"][0]], axis=0)        # (2, 1)
    out = _run_layer(h_hidden, po["W"], A12o, w12o, bias_bf, aad_bf, tm,
                     nheads=1, fout=nclass, alpha=alpha,
                     concat=False, final=True, out_dtype=jnp.float32,
                     bf16_softmax=bf16_softmax)
    return out[:N]


# ---------------------------------------------------------------------------
# Parameter init (matches the PyTorch module's xavier_uniform_(gain=1.414))
# ---------------------------------------------------------------------------
def _xavier_uniform(key, shape, gain=1.414):
    fan_in, fan_out = shape[0], shape[1]
    bound = gain * (6.0 / (fan_in + fan_out)) ** 0.5
    return jax.random.uniform(key, shape, jnp.float32, -bound, bound)


def init_adsf_params(key, nfeat, nhid, nclass, nheads):
    params = {"heads": [], "out": None}
    for _ in range(nheads):
        key, k1, k2, k3, k4 = jax.random.split(key, 5)
        a = _xavier_uniform(k2, (2 * nhid, 1))
        params["heads"].append(dict(
            W=_xavier_uniform(k1, (nfeat, nhid)),
            a1=a[:nhid, :],                       # (nhid, 1)
            a2=a[nhid:, :].T,                     # (1, nhid)
            w1=_xavier_uniform(k3, (1, 1)),
            w2=_xavier_uniform(k4, (1, 1)),
        ))
    key, k1, k2, k3, k4 = jax.random.split(key, 5)
    a = _xavier_uniform(k2, (2 * nclass, 1))
    params["out"] = dict(
        W=_xavier_uniform(k1, (nhid * nheads, nclass)),
        a1=a[:nclass, :],
        a2=a[nclass:, :].T,
        w1=_xavier_uniform(k3, (1, 1)),
        w2=_xavier_uniform(k4, (1, 1)),
    )
    return params


if __name__ == "__main__":
    N, nfeat, nhid, nclass, nheads = 8, 16, 8, 4, 2
    alpha = 0.2

    root = jax.random.PRNGKey(0)
    kx, kadj, kad, kp = jax.random.split(root, 4)

    x = jax.random.normal(kx, (N, nfeat), jnp.float32)
    adj = (jax.random.uniform(kadj, (N, N)) > 0.5).astype(jnp.float32)
    adj = jnp.maximum(adj, jnp.eye(N, dtype=jnp.float32))      # self-loops
    adj_ad = jax.random.uniform(kad, (N, N), jnp.float32)      # fingerprint scores
    params = init_adsf_params(kp, nfeat, nhid, nclass, nheads)

    out = adsf_forward(x, params, adj, adj_ad, alpha=alpha)
    out = jax.block_until_ready(out)
    assert out.shape == (N, nclass)
    assert bool(jnp.all(jnp.isfinite(out)))
    # rows of log_softmax must sum (in prob space) to ~1
    assert bool(jnp.allclose(jnp.sum(jnp.exp(out), axis=1), 1.0, atol=1e-4))
    print("KERNEL_OK")
</pallas_src>

<mosaic_0001>
module attributes {stable_mosaic.version = 11 : i64} {
  func.func @_proj_kernel(%arg0: i32, %arg1: memref<8x16xbf16, #tpu.memory_space<vmem>>, %arg2: memref<16x16xbf16, #tpu.memory_space<vmem>>, %arg3: memref<16x4xbf16, #tpu.memory_space<vmem>>, %arg4: memref<8x16xbf16, #tpu.memory_space<vmem>>, %arg5: memref<8x4xf32, #tpu.memory_space<vmem>>) attributes {dimension_semantics = [#tpu.dimension_semantics<parallel>], iteration_bounds = array<i64: 1>, scalar_prefetch = 0 : i64, scratch_operands = 0 : i64, tpu.core_type = #tpu.core_type<tc>, window_params = [{transform_indices = @transform_0, window_bounds = array<i64: 8, 16>}, {pipeline_mode = #tpu.pipeline_mode<synchronous>, transform_indices = @transform_1, window_bounds = array<i64: 16, 16>}, {pipeline_mode = #tpu.pipeline_mode<synchronous>, transform_indices = @transform_2, window_bounds = array<i64: 16, 4>}, {transform_indices = @transform_3, window_bounds = array<i64: 8, 16>}, {transform_indices = @transform_4, window_bounds = array<i64: 8, 4>}]} {
    %c0 = arith.constant 0 : index
    %c0_0 = arith.constant 0 : index
    %0 = vector.load %arg1[%c0, %c0_0] : memref<8x16xbf16, #tpu.memory_space<vmem>>, vector<8x16xbf16>
    %c0_1 = arith.constant 0 : index
    %c0_2 = arith.constant 0 : index
    %1 = vector.load %arg2[%c0_1, %c0_2] : memref<16x16xbf16, #tpu.memory_space<vmem>>, vector<16x16xbf16>
    %cst = arith.constant dense<0.000000e+00> : vector<8x16xf32>
    %2 = tpu.matmul %0, %1, %cst {dimension_numbers = #tpu.dot_dimension_numbers<[1], [0], [0], [1], [0, 0, 1, 1], [], []>} : vector<8x16xbf16>, vector<16x16xbf16>, vector<8x16xf32> -> vector<8x16xf32>
    %3 = arith.truncf %2 : vector<8x16xf32> to vector<8x16xbf16>
    %c0_3 = arith.constant 0 : index
    %c0_4 = arith.constant 0 : index
    %4 = vector.load %arg4[%c0_3, %c0_4] : memref<8x16xbf16, #tpu.memory_space<vmem>>, vector<8x16xbf16>
    tpu.vector_store %arg4[%c0_3, %c0_4], %3 {strides = array<i32>} : memref<8x16xbf16, #tpu.memory_space<vmem>>, vector<8x16xbf16>,
    %c0_5 = arith.constant 0 : index
    %c0_6 = arith.constant 0 : index
    %5 = vector.load %arg3[%c0_5, %c0_6] : memref<16x4xbf16, #tpu.memory_space<vmem>>, vector<16x4xbf16>
    %cst_7 = arith.constant dense<0.000000e+00> : vector<8x4xf32>
    %6 = tpu.matmul %3, %5, %cst_7 {dimension_numbers = #tpu.dot_dimension_numbers<[1], [0], [0], [1], [0, 0, 1, 1], [], []>} : vector<8x16xbf16>, vector<16x4xbf16>, vector<8x4xf32> -> vector<8x4xf32>
    %c0_8 = arith.constant 0 : index
    %c0_9 = arith.constant 0 : index
    %7 = vector.load %arg5[%c0_8, %c0_9] : memref<8x4xf32, #tpu.memory_space<vmem>>, vector<8x4xf32>
    tpu.vector_store %arg5[%c0_8, %c0_9], %6 {strides = array<i32>} : memref<8x4xf32, #tpu.memory_space<vmem>>, vector<8x4xf32>,
    return
  }
  func.func @transform_0(%arg0: i32) -> (i32, i32) {
    %c0_i32 = arith.constant 0 : i32
    %c0_i32_0 = arith.constant 0 : i32
    return %arg0, %c0_i32 : i32, i32
  }
  func.func @transform_1(%arg0: i32) -> (i32, i32) {
    %c0_i32 = arith.constant 0 : i32
    %c0_i32_0 = arith.constant 0 : i32
    %c0_i32_1 = arith.constant 0 : i32
    return %c0_i32, %c0_i32_0 : i32, i32
  }
  func.func @transform_2(%arg0: i32) -> (i32, i32) {
    %c0_i32 = arith.constant 0 : i32
    %c0_i32_0 = arith.constant 0 : i32
    %c0_i32_1 = arith.constant 0 : i32
    return %c0_i32, %c0_i32_0 : i32, i32
  }
  func.func @transform_3(%arg0: i32) -> (i32, i32) {
    %c0_i32 = arith.constant 0 : i32
    %c0_i32_0 = arith.constant 0 : i32
    return %arg0, %c0_i32 : i32, i32
  }
  func.func @transform_4(%arg0: i32) -> (i32, i32) {
    %c0_i32 = arith.constant 0 : i32
    %c0_i32_0 = arith.constant 0 : i32
    return %arg0, %c0_i32 : i32, i32
  }
}

</mosaic_0001>

<bundles_post_ra>
// kernel: tpu_custom_call.1
= control target key start
LH: loop header
LB: loop body
LE: loop exit
PB: predicated region body
PF: predicated region fallthrough
CT: control target
= control target key end

     0   :  { %10 = vsyncpa [#allocation3], 0  ;;  %s272_s0 = inlined_call_operand.hbm [shape: bf16[8,16], index: 0, kind: input, shape index: {}]   ;;  %s273_s1 = inlined_call_operand.vmem [shape: bf16[16,16], index: 1, kind: input, shape index: {}]   ;;  %s274_s2 = inlined_call_operand.vmem [shape: bf16[16,4], index: 2, kind: input, shape index: {}]   ;;  %s275_s3 = inlined_call_operand.hbm [shape: bf16[8,16], index: 3, kind: output, shape index: {0}]   ;;  %s276_s4 = inlined_call_operand.vmem [shape: f32[8,4], index: 4, kind: output, shape index: {1}]  }
   0x1   :  { %11 = vsyncpa [#allocation4], 0  ;;  %s228_s15 = smov [#allocation2]  }
   0x2   :  { %s18_s16 = sshll.u32 %s228_s15, 4  ;;  %s19_s16 = int_to_ptr.vmem [resolvable:$true] %s18_s16 }
   0x3   :  { %s192_s17 = scalar_lea.vmem %s19_s16, 64  ;;  %p197_p1 = scmp.lt.s32.totalorder %s19_s16, %s19_s16 }
   0x4   :  { %p193_p0 = scmp.ne.s32.totalorder %s19_s16, %s192_s17  ;;  %p198_p2 = scmp.lt.s32.totalorder %s192_s17, %s192_s17 }
   0x6   :  { %p199_p3 = por %p198_p2, %p197_p1 }
   0x8   :  { %p200_p4 = pnand %p199_p3, %p193_p0 }
   0xa   :  { %203 = shalt.err (!%p200_p4)
}
   0xb   :  { %21 = dma.hbm_to_vmem [thread:$0]  %s272_s0, 64, %s19_s16, [#allocation3]  }
   0xc   :  { %224 = dma.done.wait [#allocation3], 64  }
   0xd   :  { %225 = vsyncadd [#allocation3], 4294967232  ;;  %v229_v0 = vmov 0.0   ;;  %vm230_vm0 = vmmov 0   ;;  %v182_v1 = vld [vmem:[%s273_s1] sm:$0xff]   ;;  %vm39_vm1 = vcmask 130048  }
   0xe   :  { %166 = vmatprep.subr.bf16.mxu0 %v229_v0  ;;  %168 = vmatprep.mubr.msk.bf16.mxu0 %vm230_vm0, %v229_v0  ;;  %v30_v2 = vld [vmem:[#allocation2] sm:$0xf]  ;;  %vm84_vm2 = vcmask 125952   ;;  %s231_s0 = smov [#allocation5]  }
   0xf   :  { %172 = vmatprep.subr.bf16.mxu1 %v229_v0  ;;  %174 = vmatprep.mubr.msk.bf16.mxu1 %vm230_vm0, %v229_v0  ;;  %v183_v3 = vld [vmem:[%s274_s2] sm:$0xff]   ;;  %s145_s24 = sshll.u32 %s231_s0, 4  ;;  %s146_s24 = int_to_ptr.vmem [resolvable:$true] %s145_s24 }
  0x10   :  { %167 = vmatpush3.bf16.msra.mxu0 %v182_v1  ;;  %173 = vmatpush3.bf16.msra.mxu1 %v183_v3  ;;  %s204_s1 = scalar_lea.vmem %s146_s24, 64  ;;  %p209_p6 = scmp.lt.s32.totalorder %s146_s24, %s146_s24 }
  0x11   :  { %p205_p5 = scmp.ne.s32.totalorder %s146_s24, %s204_s1  ;;  %p210_p7 = scmp.lt.s32.totalorder %s204_s1, %s204_s1 }
  0x13   :  { %169 = vmatmul.mubr.msk.bf16.vlgmr.msra.gmra.mxu0 %vm39_vm1, %v30_v2  ;;  %p211_p8 = por %p210_p7, %p209_p6 }
  0x15   :  { %p212_p9 = pnand %p211_p8, %p205_p5 }
  0xd3   :  { %v77_v4 = vpop.f32.mrf.mxu0 }
  0xd4   :  { %v83_v5 = vpack.c.bf16 %v77_v4, %v77_v4 }
  0xd5   :  { %v170_v6 = vpop.f32.mrf.mxu0 }
  0xd6   :  { %175 = vmatmul.mubr.msk.bf16.vlgmr.msra.gmra.mxu1 %vm39_vm1, %v83_v5  ;;  %85 = vst.msk [vmem:[#allocation5] sm:$0xf] %vm84_vm2, %v83_v5 }
  0xd7   :  { %v80_v7 = vpop.f32.mrf.mxu0 }
  0xd9   :  { %v171_v8 = vpop.f32.mrf.mxu0 }
  0xda   :  { %215 = shalt.err (!%p212_p9)
}
  0xdb   :  { %148 = dma.vmem_to_hbm [thread:$0]  %s146_s24, 64, %s275_s3, [#allocation4]   ;;  %vm137_vm3 = vcmask 31744  }
 0x196   :  { %v131_v9 = vpop.f32.mrf.mxu1 }
 0x197   :  { %138 = vst.msk [vmem:[%s276_s4] sm:$0xff] %vm137_vm3, %v131_v9 }
 0x198   :  { %v176_v10 = vpop.f32.mrf.mxu1 }
 0x19a   :  { %v134_v11 = vpop.f32.mrf.mxu1 }
 0x19c   :  { %v177_v12 = vpop.f32.mrf.mxu1 }
 0x19d   :  { %226 = dma.done.wait [#allocation4], 64  }
 0x19e   :  { %227 = vsyncadd [#allocation4], 4294967232 }
 0x19f   :  { %156 = vsyncpa [#allocation3], 1 }
 0x1a0   :  { %157 = vsyncpa [#allocation4], 1 }

</bundles_post_ra>
